<compile_context>
chip_gen: v5e
topology: v5e:2x2
jax: 0.10.0
libtpu: 0.0.40
codegen_flags: <defaults>
</compile_context>

<pallas_src>
import functools

import jax
import jax.numpy as jnp
from jax.experimental import pallas as pl
from jax.experimental.pallas import tpu as pltpu


def _conv2d_kernel(x_ref, w_ref, b_ref, o_ref, *, TH, Wo, K):
    """One (batch, row-tile) step: im2col over the halo tile + one MXU matmul.

    x_ref: (1, 1, TH+K-1, Wp, Cin)  bf16 pre-shifted halo tile
    w_ref: (K*K*Cin, Cout_p)        bf16 flattened weights (lane-padded Cout)
    b_ref: (1, Cout_p)              f32 bias (lane-padded)
    o_ref: (1, 1, TH*Wo, Cout_p)    f32 lane-dense output tile
    """
    x = x_ref[0, 0]                          # (TH+K-1, Wp, Cin)
    taps = []
    for kh in range(K):                      # static unroll; K is small
        for kw in range(K):
            taps.append(x[kh:kh + TH, kw:kw + Wo, :])     # (TH, Wo, Cin)
    # (TH, Wo, K*K*Cin) -> (TH*Wo, K*K*Cin): pure relayout since Wo % 8 == 0.
    patches = jnp.concatenate(taps, axis=-1).reshape(TH * Wo, -1)
    acc = jnp.dot(patches, w_ref[...], preferred_element_type=jnp.float32)
    acc = acc + b_ref[...]                   # f32 bias on the f32 accumulator
    o_ref[0, 0] = acc.astype(o_ref.dtype)


def conv2d_pallas(x_nchw, weight_oihw, bias, padding, *,
                  row_tile=8, compute_dtype=jnp.bfloat16):
    """conv2d(x, w, stride=1, padding=K//2, groups=1) + bias, via Pallas."""
    N, Cin, H, W = x_nchw.shape
    Cout, Cin_w, K, K2 = weight_oihw.shape
    # The module's non-resampling path: stride=1, groups=1, square odd kernel,
    # 'same' padding. Assert so other configs don't silently mis-compute.
    assert Cin_w == Cin and K == K2, "expect square kernel, groups=1"
    assert K % 2 == 1 and padding == K // 2, "expect 'same' padding = K//2"

    Hp, Wp = H + 2 * padding, W + 2 * padding
    Ho, Wo = H, W                            # stride 1, same padding
    TH = row_tile if Ho % row_tile == 0 else Ho
    n_tiles = Ho // TH
    assert Wo % 8 == 0, "row tile assumes Wo is a multiple of 8 (sublane tile)"

    LANES = 128
    Cout_p = ((Cout + LANES - 1) // LANES) * LANES   # lane-dense output width

    # ---- host-side glue (layout plumbing only) -----------------------------
    x_nhwc = jnp.transpose(x_nchw, (0, 2, 3, 1)).astype(compute_dtype)
    x_pad = jnp.pad(
        x_nhwc, ((0, 0), (padding, padding), (padding, padding), (0, 0)))
    # Pre-shifted row tiles with the K-1 halo rows baked in:
    #   (N, n_tiles, TH+K-1, Wp, Cin); duplication factor (TH+K-1)/TH only.
    x_tiles = jnp.stack(
        [x_pad[:, t * TH:t * TH + TH + K - 1, :, :] for t in range(n_tiles)],
        axis=1)

    # Flattened 2-D weights (K*K*Cin, Cout) padded to lane-dense Cout_p.
    w_flat = jnp.transpose(weight_oihw, (2, 3, 1, 0)).reshape(K * K * Cin, Cout)
    w_flat = jnp.pad(w_flat, ((0, 0), (0, Cout_p - Cout))).astype(compute_dtype)
    b_pad = jnp.pad(bias.astype(jnp.float32), (0, Cout_p - Cout)).reshape(1, Cout_p)

    kernel = functools.partial(_conv2d_kernel, TH=TH, Wo=Wo, K=K)

    flops = 2 * N * Ho * Wo * K * K * Cin * Cout_p
    bytes_accessed = (x_tiles.size * x_tiles.dtype.itemsize
                      + w_flat.size * w_flat.dtype.itemsize
                      + b_pad.size * 4
                      + N * n_tiles * TH * Wo * Cout_p * 4)

    out = pl.pallas_call(
        kernel,
        out_shape=jax.ShapeDtypeStruct((N, n_tiles, TH * Wo, Cout_p),
                                       jnp.float32),
        grid=(N, n_tiles),
        in_specs=[
            pl.BlockSpec((1, 1, TH + K - 1, Wp, Cin),
                         lambda n, t: (n, t, 0, 0, 0)),
            pl.BlockSpec((K * K * Cin, Cout_p), lambda n, t: (0, 0)),
            pl.BlockSpec((1, Cout_p), lambda n, t: (0, 0)),
        ],
        out_specs=pl.BlockSpec((1, 1, TH * Wo, Cout_p),
                               lambda n, t: (n, t, 0, 0)),
        compiler_params=pltpu.CompilerParams(
            dimension_semantics=("parallel", "parallel"),
            vmem_limit_bytes=32 * 1024 * 1024),
        cost_estimate=pl.CostEstimate(flops=flops, transcendentals=0,
                                      bytes_accessed=bytes_accessed),
    )(x_tiles, w_flat, b_pad)

    # (N, n_tiles, TH*Wo, Cout_p) -> (N, Ho, Wo, Cout) -> NCHW
    out = out.reshape(N, Ho, Wo, Cout_p)[..., :Cout]
    return jnp.transpose(out, (0, 3, 1, 2)).astype(x_nchw.dtype)


def quantizer_init_stats(x, weight, a_num_bit=32, w_num_bit=32):
    """Mirrors activation/weight quantizer init-update at init_stat == 0.

    Pure parameter bookkeeping (updates a_s, a_b, w_s); with num_bit == 32 the
    quantization itself is an identity, so this never affects the forward
    output. Kept in plain JAX (not a hot path). Divisors are Python floats so
    2**32 - 1 does not overflow int32 at the jit boundary.
    """
    Qp_a = float(2 ** (a_num_bit - 1) - 1)
    Qn_a = float(-(2 ** (a_num_bit - 1)))
    a_s = (x.max() - x.min() + 1e-9) / (Qp_a - Qn_a)
    a_b = x.min() - a_s * Qn_a
    div = float(2 ** w_num_bit - 1)
    w_flat = weight.reshape(weight.shape[0], -1)
    mean = w_flat.mean(axis=1)
    std = w_flat.std(axis=1, ddof=1)            # torch.std is unbiased
    w_s = jnp.maximum(jnp.abs(mean - 3 * std), jnp.abs(mean + 3 * std)) / div
    return a_s, a_b, w_s


if __name__ == "__main__":
    key = jax.random.PRNGKey(0)
    N, Cin, H, W = 2, 4, 16, 16
    Cout, K = 8, 3

    kx, kw = jax.random.split(key)
    x = jax.random.normal(kx, (N, Cin, H, W), dtype=jnp.float32)

    # Parameter init per Conv2d.__init__: kaiming_normal, init_weight=1,
    # init_bias=0 -> bias is exactly zero but still added.
    fan_in = Cin * K * K
    weight = jnp.sqrt(1.0 / fan_in) * jax.random.normal(
        kw, (Cout, Cin, K, K), dtype=jnp.float32)
    bias = jnp.zeros((Cout,), dtype=jnp.float32)

    # Quantizer parameter bookkeeping (does not change the output).
    a_s, a_b, w_s = quantizer_init_stats(x, weight)
    jax.block_until_ready((a_s, a_b, w_s))

    out = conv2d_pallas(x, weight, bias, padding=K // 2)
    out = jax.block_until_ready(out)

    # Reference check (XLA conv) with the same bf16 operand precision / f32
    # accumulation as the kernel — same NCHW/OIHW semantics as F.conv2d.
    ref = jax.lax.conv_general_dilated(
        x.astype(jnp.bfloat16), weight.astype(jnp.bfloat16),
        window_strides=(1, 1), padding=[(K // 2, K // 2), (K // 2, K // 2)],
        dimension_numbers=("NCHW", "OIHW", "NCHW"),
        preferred_element_type=jnp.float32,
    ) + bias[None, :, None, None]
    assert out.shape == (N, Cout, H, W)
    assert jnp.allclose(out, ref, atol=1e-2, rtol=1e-2), \
        float(jnp.max(jnp.abs(out - ref)))

    print("KERNEL_OK")
</pallas_src>

<mosaic_0001>
module attributes {stable_mosaic.version = 11 : i64} {
  func.func @_conv2d_kernel(%arg0: i32, %arg1: i32, %arg2: memref<1x1x10x18x4xbf16, #tpu.memory_space<vmem>>, %arg3: memref<36x128xbf16, #tpu.memory_space<vmem>>, %arg4: memref<1x128xf32, #tpu.memory_space<vmem>>, %arg5: memref<1x1x128x128xf32, #tpu.memory_space<vmem>>) attributes {dimension_semantics = [#tpu.dimension_semantics<parallel>, #tpu.dimension_semantics<parallel>], iteration_bounds = array<i64: 2, 2>, scalar_prefetch = 0 : i64, scratch_operands = 0 : i64, tpu.core_type = #tpu.core_type<tc>, window_params = [{transform_indices = @transform_0, window_bounds = array<i64: 1, 1, 10, 18, 4>}, {pipeline_mode = #tpu.pipeline_mode<synchronous>, transform_indices = @transform_1, window_bounds = array<i64: 36, 128>}, {pipeline_mode = #tpu.pipeline_mode<synchronous>, transform_indices = @transform_2, window_bounds = array<i64: 1, 128>}, {transform_indices = @transform_3, window_bounds = array<i64: 1, 1, 128, 128>}]} {
    %c0 = arith.constant 0 : index
    %c0_0 = arith.constant 0 : index
    %c0_1 = arith.constant 0 : index
    %c0_2 = arith.constant 0 : index
    %c0_3 = arith.constant 0 : index
    %0 = vector.load %arg2[%c0, %c0_0, %c0_1, %c0_2, %c0_3] : memref<1x1x10x18x4xbf16, #tpu.memory_space<vmem>>, vector<1x1x10x18x4xbf16>
    %1 = vector.shape_cast %0 : vector<1x1x10x18x4xbf16> to vector<10x18x4xbf16>
    %2 = vector.extract_strided_slice %1 {offsets = [0, 0, 0], sizes = [8, 16, 4], strides = [1, 1, 1]} : vector<10x18x4xbf16> to vector<8x16x4xbf16>
    %3 = vector.extract_strided_slice %1 {offsets = [0, 1, 0], sizes = [8, 16, 4], strides = [1, 1, 1]} : vector<10x18x4xbf16> to vector<8x16x4xbf16>
    %4 = vector.extract_strided_slice %1 {offsets = [0, 2, 0], sizes = [8, 16, 4], strides = [1, 1, 1]} : vector<10x18x4xbf16> to vector<8x16x4xbf16>
    %5 = vector.extract_strided_slice %1 {offsets = [1, 0, 0], sizes = [8, 16, 4], strides = [1, 1, 1]} : vector<10x18x4xbf16> to vector<8x16x4xbf16>
    %6 = vector.extract_strided_slice %1 {offsets = [1, 1, 0], sizes = [8, 16, 4], strides = [1, 1, 1]} : vector<10x18x4xbf16> to vector<8x16x4xbf16>
    %7 = vector.extract_strided_slice %1 {offsets = [1, 2, 0], sizes = [8, 16, 4], strides = [1, 1, 1]} : vector<10x18x4xbf16> to vector<8x16x4xbf16>
    %8 = vector.extract_strided_slice %1 {offsets = [2, 0, 0], sizes = [8, 16, 4], strides = [1, 1, 1]} : vector<10x18x4xbf16> to vector<8x16x4xbf16>
    %9 = vector.extract_strided_slice %1 {offsets = [2, 1, 0], sizes = [8, 16, 4], strides = [1, 1, 1]} : vector<10x18x4xbf16> to vector<8x16x4xbf16>
    %10 = vector.extract_strided_slice %1 {offsets = [2, 2, 0], sizes = [8, 16, 4], strides = [1, 1, 1]} : vector<10x18x4xbf16> to vector<8x16x4xbf16>
    %11 = tpu.concatenate %2, %3, %4, %5, %6, %7, %8, %9, %10 in 2 : vector<8x16x4xbf16>, vector<8x16x4xbf16>, vector<8x16x4xbf16>, vector<8x16x4xbf16>, vector<8x16x4xbf16>, vector<8x16x4xbf16>, vector<8x16x4xbf16>, vector<8x16x4xbf16>, vector<8x16x4xbf16> -> vector<8x16x36xbf16>
    %12 = vector.shape_cast %11 : vector<8x16x36xbf16> to vector<128x36xbf16>
    %c0_4 = arith.constant 0 : index
    %c0_5 = arith.constant 0 : index
    %13 = vector.load %arg3[%c0_4, %c0_5] : memref<36x128xbf16, #tpu.memory_space<vmem>>, vector<36x128xbf16>
    %cst = arith.constant dense<0.000000e+00> : vector<128x128xf32>
    %14 = tpu.matmul %12, %13, %cst {dimension_numbers = #tpu.dot_dimension_numbers<[1], [0], [0], [1], [0, 0, 1, 1], [], []>} : vector<128x36xbf16>, vector<36x128xbf16>, vector<128x128xf32> -> vector<128x128xf32>
    %c0_6 = arith.constant 0 : index
    %c0_7 = arith.constant 0 : index
    %15 = vector.load %arg4[%c0_6, %c0_7] : memref<1x128xf32, #tpu.memory_space<vmem>>, vector<1x128xf32>
    %16 = vector.broadcast %15 : vector<1x128xf32> to vector<128x128xf32>
    %17 = arith.addf %14, %16 : vector<128x128xf32>
    %c0_8 = arith.constant 0 : index
    %c0_9 = arith.constant 0 : index
    %c0_10 = arith.constant 0 : index
    %c0_11 = arith.constant 0 : index
    %18 = vector.load %arg5[%c0_8, %c0_9, %c0_10, %c0_11] : memref<1x1x128x128xf32, #tpu.memory_space<vmem>>, vector<1x1x128x128xf32>
    %19 = vector.shape_cast %18 : vector<1x1x128x128xf32> to vector<128x128xf32>
    %20 = vector.shape_cast %17 : vector<128x128xf32> to vector<1x1x128x128xf32>
    tpu.vector_store %arg5[%c0_8, %c0_9, %c0_10, %c0_11], %20 {strides = array<i32>} : memref<1x1x128x128xf32, #tpu.memory_space<vmem>>, vector<1x1x128x128xf32>,
    return
  }
  func.func @transform_0(%arg0: i32, %arg1: i32) -> (i32, i32, i32, i32, i32) {
    %c0_i32 = arith.constant 0 : i32
    %c0_i32_0 = arith.constant 0 : i32
    %c0_i32_1 = arith.constant 0 : i32
    %c0_i32_2 = arith.constant 0 : i32
    return %arg0, %arg1, %c0_i32, %c0_i32_0, %c0_i32_1 : i32, i32, i32, i32, i32
  }
  func.func @transform_1(%arg0: i32, %arg1: i32) -> (i32, i32) {
    %c0_i32 = arith.constant 0 : i32
    %c0_i32_0 = arith.constant 0 : i32
    %c0_i32_1 = arith.constant 0 : i32
    return %c0_i32, %c0_i32_0 : i32, i32
  }
  func.func @transform_2(%arg0: i32, %arg1: i32) -> (i32, i32) {
    %c0_i32 = arith.constant 0 : i32
    %c0_i32_0 = arith.constant 0 : i32
    %c0_i32_1 = arith.constant 0 : i32
    return %c0_i32, %c0_i32_0 : i32, i32
  }
  func.func @transform_3(%arg0: i32, %arg1: i32) -> (i32, i32, i32, i32) {
    %c0_i32 = arith.constant 0 : i32
    %c0_i32_0 = arith.constant 0 : i32
    %c0_i32_1 = arith.constant 0 : i32
    return %arg0, %arg1, %c0_i32, %c0_i32_0 : i32, i32, i32, i32
  }
}

</mosaic_0001>

<bundles_post_ra>
// kernel: tpu_custom_call.1
= control target key start
LH: loop header
LB: loop body
LE: loop exit
PB: predicated region body
PF: predicated region fallthrough
CT: control target
= control target key end

     0   :  { %8 = vsyncpa [#allocation3], 0  ;;  %s1724_s0 = inlined_call_operand.vmem [shape: bf16[2,2,10,18,4], index: 0, kind: input, shape index: {}]   ;;  %s1725_s1 = inlined_call_operand.vmem [shape: bf16[36,128], index: 1, kind: input, shape index: {}]   ;;  %s1726_s2 = inlined_call_operand.vmem [shape: f32[1,128], index: 2, kind: input, shape index: {}]   ;;  %s1727_s3 = inlined_call_operand.hbm [shape: f32[2,2,128,128], index: 3, kind: output, shape index: {}]  }
   0x1   :  { %10 = vsyncpa [#allocation3 + $0x1], 0  ;;  %s1235_s12 = smov 0   ;;  %s1237_s13 = smov 0  }
   0x2   :  { %s1239_s14 = smov 0   ;;  %s1241_s15 = smov 0  }
   0x3   :  { %s1243_s16 = smov 0   ;;  %s1245_s17 = smov 0  }
   0x4   :  { %s1247_s18 = smov 0   ;;  %s1249_s19 = smov 0  }
   0x5 LB: > { %s937_s20 = sadd.s32 4294967295, %s1204_s19   ;;  %s938_s21 = sadd.s32 4294967294, %s1204_s19   ;;  %s1204_s19 = sphi %s1249_s19, %s16_s19   ;;  %s1200_s18 = sphi %s1247_s18, %s1736_s18   ;;  %s1196_s17 = sphi %s1245_s17, %s1735_s17   ;;  %s1192_s16 = sphi %s1243_s16, %s1734_s16   ;;  %s1188_s15 = sphi %s1241_s15, %s1733_s15   ;;  %s1184_s14 = sphi %s1239_s14, %s1732_s14   ;;  %s1180_s13 = sphi %s1237_s13, %s1731_s13   ;;  %s1176_s12 = sphi %s1235_s12, %s1730_s12  }
   0x6   : > { %s25_s22 = sadd.s32 1, %s1196_s17  ;;  %s28_s23 = sadd.s32 1, %s1200_s18 }
   0x7   : > { %p26_p0 = scmp.ge.s32.totalorder %s25_s22, 2  ;;  %p117_p1 = scmp.ne.s32.totalorder %s1184_s14, %s1180_s13 }
   0x8   : > { %p118_p2 = scmp.eq.s32.totalorder %s937_s20, 3  ;;  %p123_p5 = scmp.ne.s32.totalorder %s1180_s13, %s1176_s12 }
   0x9   : > { %s1738_s22 = smov (%p26_p0, %s25_s22), 0  ;;  %s1740_s23 = smov (!%p26_p0, %s28_s23), %s1200_s18 }
   0xa   : > { %s103_s24 = ssub.s32 %s1196_s17, %s1738_s22  ;;  %p1286_p3 = por %p118_p2, %p117_p1 }
   0xb   : > { %p30_p4 = scmp.ge.s32.totalorder %s1740_s23, 2  ;;  %p124_p6 = scmp.eq.s32.totalorder %s938_s21, 3 }
   0xc   : > { %p941_p7 = scmp.ge.s32.totalorder %s1204_s19, 1  ;;  %p160_p9 = scmp.lt.s32.totalorder %s1204_s19, 5 }
   0xd   : > { %s1742_s23 = smov (%p30_p4, %s1740_s23), 0  ;;  %p1295_p8 = por %p124_p6, %p123_p5 }
   0xe   : > { %s102_s27 = ssub.s32 %s1200_s18, %s1742_s23  ;;  %s107_s28 = sadd.s32 1, %s1184_s14 }
   0xf   : > { %s104_s29 = sor.u32 %s103_s24, %s102_s27  ;;  %p161_p10 = pnand %p941_p7, %p160_p9 }
  0x10   : > { %p105_p11 = scmp.eq.s32.totalorder %s104_s29, 0  ;;  %p188_p12 = scmp.lt.s32.totalorder (!%p161_p10), %s1192_s16, 1 }
  0x11   : > { %164 = sbr.rel (%p161_p10) target bundleno = 464 (0x1d0), region = 32  ;;  %p190_p13 = scmp.lt.s32.totalorder (!%p161_p10), %s1188_s15, 1 }
  0x12   : > { %s1304_s30 = scalar_select %p105_p11, %s1184_s14, %s107_s28  }
  0x13   : > { %s1206_s21 = smov (!%p161_p10), 12   ;;  %s1207_s24 = smov (!%p161_p10), 8  }
  0x14   : > { %s1208_s27 = smov (!%p161_p10), 4   ;;  %s1209_s28 = smov (!%p161_p10), 20  }
  0x15   : > { %s1210_s29 = smov (!%p161_p10), 16  }
  0x16   : > { %s189_s4 = scalar_select %p188_p12, %s1192_s16, 1  ;;  %vm405_vm0 = vcmask 1046528   ;;  %vm292_vm1 = vsmask.f32 7424  ;;  %vm765_vm2 = vcmask 1041408   ;;  %vm588_vm3 = vcmask 31744  }
  0x17   : > { %s191_s5 = scalar_select %p190_p13, %s1188_s15, 1  ;;  %vm605_vm4 = vcmask 64512   ;;  %vm622_vm5 = vcmask 97280   ;;  %vm639_vm6 = vcmask 130048   ;;  %vm656_vm7 = vcmask 162816  }
  0x18   : > { %s1028_s6 = smul.u32 60, %s189_s4  ;;  %s1211_s4 = smov 24   ;;  %vm673_vm8 = vcmask 195584   ;;  %vm707_vm9 = vcmask 261120   ;;  %vm690_vm10 = vcmask 228352   ;;  %vm748_vm11 = vcmask 293888  }
  0x19   : > { %s1027_s7 = smul.u32 30, %s191_s5  ;;  %s1212_s5 = smov 28  }
  0x1b   : > { %s194_s8 = sadd.s32 %s1028_s6, %s1027_s7  ;;  %s1213_s6 = smov 32  }
  0x1c   : > { %s943_s9 = sshll.u32 %s194_s8, 2 }
  0x1d   : > { %s1313_s20 = scalar_lea.vmem %s1724_s0, %s943_s9 }
  0x1e   : > { %v1316_v0 = vld [vmem:[%s1313_s20 + $0x30] sm:$0xff]  ;;  %v212_v1 = vld [vmem:[%s1313_s20 + $0x38] sm:$0x1]  ;;  %v1320_v2 = vld [vmem:[%s1313_s20 + $0x48] sm:$0xff] }
  0x1f   : > { %v280_v3 = vunpack.c.l.b16 %v212_v1  ;;  %v218_v4 = vld [vmem:[%s1313_s20 + $0x50] sm:$0x1]  ;;  %v342_v5 = vshrl.u32 %v1316_v0, 16  ;;  %v344_v6 = vshll.u32 %v1316_v0, 16  ;;  %v221_v8 = vld [vmem:[%s1313_s20 + $0x5c] sm:$0x1] }
  0x20   : > { %v282_v7 = vunpack.c.l.b16 %v218_v4  ;;  %v1327_v9 = vld [vmem:[%s1313_s20 + $0x3c] sm:$0xff]  ;;  %v418_v11 = vrot.slane %v1316_v0, 1  ;;  %v368_v12 = vshll.u32 %v1320_v2, 16  ;;  %v1332_v15 = vld [vmem:[%s1313_s20 + $0x54] sm:$0xff]  ;;  %v283_v18 = vunpack.c.l.b16 %v221_v8  ;;  %v215_v19 = vld [vmem:[%s1313_s20 + $0x44] sm:$0x1] }
  0x21   : > { %v288_v10 = vpack.c.b16 %v280_v3, %v280_v3  ;;  %v346_v13 = vrot.slane %v344_v6, 1  ;;  %459 = vrot.lane.b32.xlu2 %v1327_v9, %s1206_s21  ;;  %v366_v21 = vshrl.u32 %v1320_v2, 16  ;;  %v380_v26 = vshll.u32 %v1332_v15, 16  ;;  %v206_v49 = vld [vmem:[%s1313_s20 + $0x20] sm:$0x1]  ;;  %v1377_v54 = vld [vmem:[%s1313_s20 + $0x18] sm:$0xff] }
  0x22   : > { %v290_v14 = vpack.c.b16 %v282_v7, %v282_v7  ;;  %v370_v24 = vrot.slane %v368_v12, 1  ;;  %v281_v27 = vunpack.c.l.b16 %v215_v19  ;;  %v424_v29 = vrot.slane %v1320_v2, 1  ;;  %v200_v52 = vld [vmem:[%s1313_s20 + $0x8] sm:$0x1]  ;;  %v1383_v57 = vld [vmem:[%s1313_s20] sm:$0xff] }
  0x23   : > { %v419_v16 = vrot.slane %v288_v10, 1  ;;  %v349_v17 = vshll.u32 %v288_v10, 16  ;;  %v347_v20 = vor.u32 %v346_v13, %v342_v5  ;;  %v291_v31 = vpack.c.b16 %v283_v18, %v283_v18  ;;  %v1392_v63 = vld [vmem:[%s1313_s20 + $0x60] sm:$0xff]  ;;  %v224_v4 = vld [vmem:[%s1313_s20 + $0x68] sm:$0x1] }
  0x24   : > { %v373_v25 = vshll.u32 %v290_v14, 16  ;;  %v425_v30 = vrot.slane %v290_v14, 1  ;;  %v371_v32 = vor.u32 %v370_v24, %v366_v21  ;;  %v289_v34 = vpack.c.b16 %v281_v27, %v281_v27 }
  0x25   : > { %v1339_v22 = vsel %vm405_vm0, %v418_v11, %v419_v16  ;;  %v351_v23 = vrot.slane %v349_v17, 1  ;;  %v356_v35 = vshll.u32 %v1327_v9, 16  ;;  %v378_v36 = vshrl.u32 %v1332_v15, 16 }
  0x26   : > { %438 = vrot.lane.b32.xlu1 %v1339_v22, %s1207_s24  ;;  %v375_v33 = vrot.slane %v373_v25, 1  ;;  %v382_v37 = vrot.slane %v380_v26, 1  ;;  %v1355_v38 = vsel %vm405_vm0, %v424_v29, %v425_v30  ;;  %v385_v39 = vshll.u32 %v291_v31, 16  ;;  %v209_v30 = vld [vmem:[%s1313_s20 + $0x2c] sm:$0x1] }
  0x27   : > { %v1345_v28 = vsel %vm292_vm1, %v347_v20, %v351_v23  ;;  %v421_v40 = vrot.slane %v1327_v9, 1  ;;  %v422_v41 = vrot.slane %v289_v34, 1  ;;  %v354_v43 = vshrl.u32 %v1327_v9, 16 }
  0x28   : > { %397 = vrot.lane.b32.xlu0 %v1345_v28, %s1208_s27  ;;  %v1359_v42 = vsel %vm292_vm1, %v371_v32, %v375_v33  ;;  %v358_v44 = vrot.slane %v356_v35, 1  ;;  %v361_v45 = vshll.u32 %v289_v34, 16  ;;  %v383_v46 = vor.u32 %v382_v37, %v378_v36  ;;  %v203_v33 = vld [vmem:[%s1313_s20 + $0x14] sm:$0x1]  ;;  %v1426_v37 = vld [vmem:[%s1313_s20 + $0x24] sm:$0xff] }
  0x29   : > { %463 = vrot.lane.b32.xlu2 %v1332_v15, %s1206_s21  ;;  %v387_v47 = vrot.slane %v385_v39, 1  ;;  %v1365_v48 = vsel %vm405_vm0, %v421_v40, %v422_v41  ;;  %v278_v55 = vunpack.c.l.b16 %v206_v49  ;;  %v276_v58 = vunpack.c.l.b16 %v200_v52 }
  0x2a   : > { %v359_v50 = vor.u32 %v358_v44, %v354_v43  ;;  %v363_v51 = vrot.slane %v361_v45, 1  ;;  %v320_v60 = vshll.u32 %v1377_v54, 16  ;;  %v427_v61 = vrot.slane %v1332_v15, 1  ;;  %v1432_v43 = vld [vmem:[%s1313_s20 + $0xc] sm:$0xff] }
  0x2b   : > { %v1374_v53 = vsel %vm292_vm1, %v383_v46, %v387_v47  ;;  %v286_v59 = vpack.c.b16 %v278_v55, %v278_v55  ;;  %v428_v62 = vrot.slane %v291_v31, 1  ;;  %v284_v1 = vpack.c.b16 %v276_v58, %v276_v58 }
  0x2c   : > { %v1380_v56 = vsel %vm292_vm1, %v359_v50, %v363_v51  ;;  %v296_v3 = vshll.u32 %v1383_v57, 16  ;;  %v318_v5 = vshrl.u32 %v1377_v54, 16  ;;  %v322_v6 = vrot.slane %v320_v60, 1 }
  0x2d   : > { %v325_v7 = vshll.u32 %v286_v59, 16  ;;  %v1400_v8 = vsel %vm405_vm0, %v427_v61, %v428_v62  ;;  %v294_v10 = vshrl.u32 %v1383_v57, 16  ;;  %v301_v12 = vshll.u32 %v284_v1, 16 }
  0x2e   : > { %442 = vrot.lane.b32.xlu1 %v1355_v38, %s1207_s24  ;;  %v298_v11 = vrot.slane %v296_v3, 1  ;;  %v468_v13 = vunpack.c.l.b16 %v224_v4  ;;  %v323_v14 = vor.u32 %v322_v6, %v318_v5  ;;  %v473_v20 = vshll.u32 %v1392_v63, 16 }
  0x2f   : > { %v327_v16 = vrot.slane %v325_v7, 1  ;;  %v303_v18 = vrot.slane %v301_v12, 1  ;;  %v412_v23 = vrot.slane %v1377_v54, 1  ;;  %v413_v24 = vrot.slane %v286_v59, 1 }
  0x30   : > { %401 = vrot.lane.b32.xlu0 %v1359_v42, %s1208_s27  ;;  %v299_v17 = vor.u32 %v298_v11, %v294_v10  ;;  %v469_v19 = vpack.c.b16 %v468_v13, %v468_v13  ;;  %v471_v26 = vshrl.u32 %v1392_v63, 16  ;;  %v475_v27 = vrot.slane %v473_v20, 1 }
  0x31   : > { %509 = vrot.lane.b32.xlu2 %v1365_v48, %s1209_s28  ;;  %v1411_v21 = vsel %vm292_vm1, %v323_v14, %v327_v16  ;;  %v406_v31 = vrot.slane %v1383_v57, 1  ;;  %v407_v32 = vrot.slane %v284_v1, 1  ;;  %v1422_v34 = vsel %vm405_vm0, %v412_v23, %v413_v24  ;;  %v1015_v23 = vld [vmem:[%s1313_s20 + $0x6c] sm:$0xff] }
  0x32   : > { %v304_v25 = vsel %vm292_vm1, %v299_v17, %v303_v18  ;;  %v478_v29 = vshll.u32 %v469_v19, 16  ;;  %v476_v35 = vor.u32 %v475_v27, %v471_v26  ;;  %v279_v39 = vunpack.c.l.b16 %v209_v30 }
  0x33   : > { %v277_v40 = vunpack.c.l.b16 %v203_v33  ;;  %v408_v41 = vsel %vm405_vm0, %v406_v31, %v407_v32  ;;  %v332_v44 = vshll.u32 %v1426_v37, 16  ;;  %v498_v47 = vrot.slane %v1392_v63, 1 }
  0x34   : > { %v480_v36 = vrot.slane %v478_v29, 1  ;;  %v287_v46 = vpack.c.b16 %v279_v39, %v279_v39  ;;  %v499_v49 = vrot.slane %v469_v19, 1  ;;  %v308_v51 = vshll.u32 %v1432_v43, 16  ;;  %v227_v19 = vld [vmem:[%s1313_s20 + $0x74] sm:$0x1] }
  0x35   : > { %v285_v50 = vpack.c.b16 %v277_v40, %v277_v40  ;;  %v330_v52 = vshrl.u32 %v1426_v37, 16  ;;  %v334_v55 = vrot.slane %v332_v44, 1  ;;  %v306_v60 = vshrl.u32 %v1432_v43, 16 }
  0x36   : > { %494 = vrot.lane.b32.xlu1 %v1374_v53, %s1210_s29  ;;  %v481_v45 = vsel %vm292_vm1, %v476_v35, %v480_v36  ;;  %v337_v58 = vshll.u32 %v287_v46, 16  ;;  %v500_v59 = vsel %vm405_vm0, %v498_v47, %v499_v49  ;;  %v310_v61 = vrot.slane %v308_v51, 1  ;;  %v1016_v47 = vld [vmem:[%s1725_s1] sm:$0xff] }
  0x37   : > { %v313_v62 = vshll.u32 %v285_v50, 16  ;;  %v335_v1 = vor.u32 %v334_v55, %v330_v52  ;;  %v415_v10 = vrot.slane %v1426_v37, 1  ;;  %v416_v11 = vrot.slane %v287_v46, 1 }
  0x38   : > { %490 = vrot.lane.b32.xlu0 %v1380_v56, %s1210_s29  ;;  %v339_v3 = vrot.slane %v337_v58, 1  ;;  %v311_v4 = vor.u32 %v310_v61, %v306_v60  ;;  %v409_v12 = vrot.slane %v1432_v43, 1  ;;  %v410_v13 = vrot.slane %v285_v50, 1 }
  0x39   : > { %534 = vrot.lane.b32.xlu2 %v1392_v63, %s1211_s4  ;;  %v315_v5 = vrot.slane %v313_v62, 1  ;;  %v1462_v14 = vsel %vm405_vm0, %v415_v10, %v416_v11  ;;  %v539_v20 = vunpack.c.l.b16 %v227_v19 }
  0x3a   : > { %v1447_v6 = vsel %vm292_vm1, %v335_v1, %v339_v3  ;;  %v1465_v16 = vsel %vm405_vm0, %v409_v12, %v410_v13 }
  0x3b   : > { %v316_v7 = vsel %vm292_vm1, %v311_v4, %v315_v5  ;;  %v540_v24 = vpack.c.b16 %v539_v20, %v539_v20 }
  0x3d   : > { %v549_v29 = vshll.u32 %v540_v24, 16  ;;  %v570_v50 = vrot.slane %v540_v24, 1 }
  0x3e   : > { %530 = vrot.lane.b32.xlu1 %v1320_v2, %s1211_s4 }
  0x3f   : > { %v551_v30 = vrot.slane %v549_v29, 1 }
  0x40   : > { %513 = vrot.lane.b32.xlu0 %v1400_v8, %s1209_s28 }
  0x41   : > { %561 = vrot.lane.b32.xlu2 %v1359_v42, %s1212_s5 }
  0x46   : > { %393 = vrot.lane.b32.xlu1 %v1411_v21, %s1208_s27 }
  0x48   : > { %389 = vrot.lane.b32.xlu0 %v304_v25, %s1208_s27  ;;  %v544_v25 = vshll.u32 %v1015_v23, 16 }
  0x49   : > { %434 = vrot.lane.b32.xlu2 %v1422_v34, %s1207_s24 }
  0x4a   : > { %v546_v27 = vrot.slane %v544_v25, 1 }
  0x4e   : > { %430 = vrot.lane.b32.xlu1 %v408_v41, %s1207_s24 }
  0x50   : > { %565 = vrot.lane.b32.xlu0 %v481_v45, %s1212_s5 }
  0x51   : > { %451 = vrot.lane.b32.xlu2 %v1432_v43, %s1206_s21 }
  0x56   : > { %584 = vrot.lane.b32.xlu1 %v500_v59, %s1213_s6 }
  0x58   : > { %580 = vrot.lane.b32.xlu0 %v1355_v38, %s1213_s6 }
  0x59   : > { %486 = vrot.lane.b32.xlu2 %v1447_v6, %s1210_s29 }
  0x5e   : > { %482 = vrot.lane.b32.xlu1 %v316_v7, %s1210_s29 }
  0x60   : > { %455 = vrot.lane.b32.xlu0 %v1426_v37, %s1206_s21 }
  0x61   : > { %522 = vrot.lane.b32.xlu2 %v1377_v54, %s1211_s4 }
  0x66   : > { %505 = vrot.lane.b32.xlu1 %v1462_v14, %s1209_s28 }
  0x68   : > { %501 = vrot.lane.b32.xlu0 %v1465_v16, %s1209_s28 }
  0x69   : > { %557 = vrot.lane.b32.xlu2 %v1345_v28, %s1212_s5 }
  0x6e   : > { %553 = vrot.lane.b32.xlu1 %v1411_v21, %s1212_s5 }
  0x70   : > { %526 = vrot.lane.b32.xlu0 %v1316_v0, %s1211_s4 }
  0x71   : > { %399 = vrot.lane.b32.xlu2 %v1380_v56, %s1208_s27 }
  0x76   : > { %576 = vrot.lane.b32.xlu1 %v1339_v22, %s1213_s6 }
  0x78   : > { %572 = vrot.lane.b32.xlu0 %v1422_v34, %s1213_s6 }
  0x79   : > { %444 = vrot.lane.b32.xlu2 %v1400_v8, %s1207_s24 }
  0x7b   : > { %v1485_v17 = vpop.permute.xlu2 %459 }
  0x7e   : > { %440 = vrot.lane.b32.xlu1 %v1365_v48, %s1207_s24 }
  0x80   : > { %403 = vrot.lane.b32.xlu0 %v1374_v53, %s1208_s27 }
  0x81   : > { %492 = vrot.lane.b32.xlu2 %v1359_v42, %s1210_s29  ;;  %v542_v42 = vshrl.u32 %v1015_v23, 16 }
  0x83   : > { %v1493_v18 = vpop.permute.xlu2 %463 }
  0x86   : > { %465 = vrot.lane.b32.xlu1 %v1392_v63, %s1206_s21  ;;  %v547_v63 = vor.u32 %v546_v27, %v542_v42 }
  0x88   : > { %461 = vrot.lane.b32.xlu0 %v1320_v2, %s1206_s21  ;;  %v552_v32 = vsel %vm292_vm1, %v547_v63, %v551_v30 }
  0x89   : > { %515 = vrot.lane.b32.xlu2 %v500_v59, %s1209_s28 }
  0x8b   : > { %v1502_v26 = vpop.permute.xlu2 %509 }
  0x8e   : > { %511 = vrot.lane.b32.xlu1 %v1355_v38, %s1209_s28  ;;  %v728_v38 = vld [vmem:[%s1725_s1 + $0x10] sm:$0x3] }
  0x8f   : > { %v742_v36 = vunpack.c.l.b16 %v728_v38 }
  0x90   : > { %496 = vrot.lane.b32.xlu0 %v481_v45, %s1210_s29  ;;  %v1017_v45 = vld [vmem:[%s1725_s1 + $0x8] sm:$0xff] }
  0x91   : > { %391 = vrot.lane.b32.xlu2 %v316_v7, %s1208_s27  ;;  %v745_v40 = vpack.c.b16 %v742_v36, %v742_v36 }
  0x93   : > { %v1508_v31 = vpop.permute.xlu2 %534  ;;  %v767_v41 = vsel %vm765_vm2, %v745_v40, 0 }
  0x94   : > { %1020 = vmatpush.bf16.msra.mxu3 %v767_v41  ;;  %1019 = vmatpush.bf16.msra.mxu2 %v767_v41 }
  0x95   : > { %1018 = vmatpush.bf16.msra.mxu1 %v767_v41  ;;  %774 = vmatpush.bf16.msra.mxu0 %v767_v41 }
  0x96   : > { %536 = vrot.lane.b32.xlu1 %v1015_v23, %s1211_s4 }
  0x98   : > { %v439_v33 = vpop.permute.xlu1 %438  ;;  %532 = vrot.lane.b32.xlu0 %v1332_v15, %s1211_s4  ;;  %1023 = vmatpush.bf16.msra.mxu3 %v1017_v45 }
  0x99   : > { %567 = vrot.lane.b32.xlu2 %v552_v32, %s1212_s5  ;;  %1022 = vmatpush.bf16.msra.mxu2 %v1017_v45 }
  0x9a   : > { %v398_v35 = vpop.permute.xlu0 %397  ;;  %1021 = vmatpush.bf16.msra.mxu1 %v1017_v45  ;;  %775 = vmatpush.bf16.msra.mxu0 %v1017_v45 }
  0x9b   : > { %v1518_v39 = vpop.permute.xlu2 %561  ;;  %v598_v1 = vsel %vm588_vm3, %v1316_v0, %v398_v35 }
  0x9c   : > { %1026 = vmatpush.bf16.msra.mxu3 %v1016_v47 }
  0x9d   : > { %1025 = vmatpush.bf16.msra.mxu2 %v1016_v47 }
  0x9e   : > { %563 = vrot.lane.b32.xlu1 %v1374_v53, %s1212_s5  ;;  %1024 = vmatpush.bf16.msra.mxu1 %v1016_v47 }
  0x9f   : > { %776 = vmatpush.bf16.msra.mxu0 %v1016_v47 }
  0xa0   : > { %v443_v44 = vpop.permute.xlu1 %442  ;;  %395 = vrot.lane.b32.xlu0 %v1447_v6, %s1208_s27 }
  0xa1   : > { %582 = vrot.lane.b32.xlu2 %v1400_v8, %s1213_s6  ;;  %v569_v8 = vrot.slane %v1015_v23, 1 }
  0xa2   : > { %v402_v46 = vpop.permute.xlu0 %401 }
  0xa3   : > { %v1529_v53 = vpop.permute.xlu2 %434  ;;  %v571_v55 = vsel %vm405_vm0, %v569_v8, %v570_v50 }
  0xa6   : > { %436 = vrot.lane.b32.xlu1 %v1462_v14, %s1207_s24 }
  0xa8   : > { %v495_v49 = vpop.permute.xlu1 %494  ;;  %432 = vrot.lane.b32.xlu0 %v1465_v16, %s1207_s24 }
  0xa9   : > { %457 = vrot.lane.b32.xlu2 %v1316_v0, %s1206_s21 }
  0xaa   : > { %v491_v51 = vpop.permute.xlu0 %490 }
  0xab   : > { %v1540_v52 = vpop.permute.xlu2 %451 }
  0xae   : > { %453 = vrot.lane.b32.xlu1 %v1377_v54, %s1206_s21  ;;  %s185_s21 = sand.u32 1, %s1180_s13  }
  0xaf   : > { %s942_s27 = sshll.u32 %s185_s21, 7 }
  0xb0   : > { %v531_v58 = vpop.permute.xlu1 %530  ;;  %586 = vrot.lane.b32.xlu0 %v571_v55, %s1213_s6 }
  0xb1   : > { %503 = vrot.lane.b32.xlu2 %v1422_v34, %s1209_s28  ;;  %v602_v34 = vsel %vm588_vm3, %v1320_v2, %v402_v46 }
  0xb2   : > { %v514_v59 = vpop.permute.xlu0 %513  ;;  %v619_v3 = vsel %vm605_vm4, %v602_v34, %v443_v44 }
  0xb3   : > { %v487_v60 = vpop.permute.xlu2 %486  ;;  %v636_v0 = vsel %vm622_vm5, %v619_v3, %v1493_v18 }
  0xb4   : > { %v653_v7 = vsel %vm639_vm6, %v636_v0, %v495_v49 }
  0xb5   : > { %v670_v11 = vsel %vm656_vm7, %v653_v7, %v514_v59 }
  0xb6   : > { %488 = vrot.lane.b32.xlu1 %v1345_v28, %s1210_s29  ;;  %v615_v28 = vsel %vm605_vm4, %v598_v1, %v439_v33  ;;  %v687_v13 = vsel %vm673_vm8, %v670_v11, %v1508_v31 }
  0xb7   : > { %v632_v2 = vsel %vm622_vm5, %v615_v28, %v1485_v17 }
  0xb8   : > { %v394_v61 = vpop.permute.xlu1 %393  ;;  %484 = vrot.lane.b32.xlu0 %v1411_v21, %s1210_s29  ;;  %v649_v10 = vsel %vm639_vm6, %v632_v2, %v491_v51 }
  0xb9   : > { %528 = vrot.lane.b32.xlu2 %v1327_v9, %s1211_s4  ;;  %v594_v42 = vsel %vm588_vm3, %v1377_v54, %v394_v61 }
  0xba   : > { %v390_v62 = vpop.permute.xlu0 %389  ;;  %v611_v29 = vsel %vm605_vm4, %v594_v42, %v1529_v53 }
  0xbb   : > { %v523_v21 = vpop.permute.xlu2 %522  ;;  %v590_v63 = vsel %vm588_vm3, %v1383_v57, %v390_v62 }
  0xbe   : > { %524 = vrot.lane.b32.xlu1 %v1426_v37, %s1211_s4  ;;  %s1659_s4 = scalar_lea.vmem [#allocation2], %s942_s27 }
  0xbf   : > { %s849_s20 = sshll.u32 %s1659_s4, 4  ;;  %s850_s20 = int_to_ptr.vmem [resolvable:$true] %s849_s20 }
  0xc0   : > { %v431_v4 = vpop.permute.xlu1 %430  ;;  %507 = vrot.lane.b32.xlu0 %v1339_v22, %s1209_s28  ;;  %v666_v22 = vsel %vm656_vm7, %v649_v10, %v1502_v26 }
  0xc1   : > { %574 = vrot.lane.b32.xlu2 %v1462_v14, %s1213_s6  ;;  %v683_v12 = vsel %vm673_vm8, %v666_v22, %v531_v58  ;;  %v607_v32 = vsel %vm605_vm4, %v590_v63, %v431_v4 }
  0xc2   : > { %v566_v5 = vpop.permute.xlu0 %565  ;;  %v624_v38 = vsel %vm622_vm5, %v607_v32, %v1540_v52 }
  0xc3   : > { %v704_v14 = vsel %vm690_vm10, %v687_v13, %v566_v5  ;;  %v558_v18 = vpop.permute.xlu2 %557 }
  0xc6   : > { %559 = vrot.lane.b32.xlu1 %v1380_v56, %s1212_s5  ;;  %v700_v56 = vsel %vm690_vm10, %v683_v12, %v1518_v39 }
  0xc8   : > { %v585_v16 = vpop.permute.xlu1 %584  ;;  %555 = vrot.lane.b32.xlu0 %v1447_v6, %s1212_s5  ;;  %s1001_s5 = sshll.u32 %s1188_s15, 4  ;;  %s835_s15 = scalar_lea.sflag [#allocation3], %s185_s21 }
  0xc9   : > { %v721_v17 = vsel %vm707_vm9, %v704_v14, %v585_v16 }
  0xca   : > { %998 = vmatmul.msk.bf16.vlgmr.msra.gmra.mxu3 %vm748_vm11, %v721_v17  ;;  %v581_v19 = vpop.permute.xlu0 %580 }
  0xcb   : > { %v717_v20 = vsel %vm707_vm9, %v700_v56, %v581_v19  ;;  %v400_v25 = vpop.permute.xlu2 %399 }
  0xcc   : > { %996 = vmatmul.msk.bf16.vlgmr.msra.gmra.mxu2 %vm748_vm11, %v717_v20  ;;  %v600_v61 = vsel %vm588_vm3, %v1327_v9, %v400_v25 }
  0xd0   : > { %v483_v23 = vpop.permute.xlu1 %482  ;;  %578 = vrot.lane.b32.xlu0 %v1365_v48, %s1213_s6  ;;  %s1002_s6 = sshll.u32 %s1192_s16, 5 }
  0xd1   : > { %v641_v35 = vsel %vm639_vm6, %v624_v38, %v483_v23  ;;  %s846_s7 = sadd.s32 %s1002_s6, %s1001_s5  ;;  %s1130_s6 = scalar_lea.hbm %s1727_s3, 512 }
  0xd2   : > { %v456_v24 = vpop.permute.xlu0 %455  ;;  %s1003_s8 = sshll.u32 %s846_s7, 3 }
  0xd3   : > { %v445_v27 = vpop.permute.xlu2 %444  ;;  %v628_v30 = vsel %vm622_vm5, %v611_v29, %v456_v24  ;;  %s848_s11 = scalar_lea.hbm %s1727_s3, %s1003_s8 }
  0xd4   : > { %v645_v33 = vsel %vm639_vm6, %v628_v30, %v487_v60  ;;  %s851_s27 = sshll.u32 %s848_s11, 4  ;;  %s852_s27 = int_to_ptr.hbm [resolvable:$true] %s851_s27 }
  0xd5   : > { %s1124_s16 = sshra.s32 %s852_s27, 4  ;;  %s1125_s16 = int_to_ptr.hbm [resolvable:$true] %s1124_s16 }
  0xd6   : > { %s1126_s28 = scalar_lea.hbm %s1125_s16, 128  ;;  %p1131_p4 = scmp.lt.s32.totalorder %s1125_s16, %s1727_s3 }
  0xd7   : > { %p1127_p0 = scmp.ne.s32.totalorder %s1125_s16, %s1126_s28  ;;  %p1132_p5 = scmp.lt.s32.totalorder %s1130_s6, %s1126_s28 }
  0xd8   : > { %v506_v6 = vpop.permute.xlu1 %505 }
  0xd9   : > { %v662_v54 = vsel %vm656_vm7, %v645_v33, %v506_v6  ;;  %p1128_p1 = pnand %p1127_p0, %p1286_p3  ;;  %p1133_p6 = por %p1132_p5, %p1131_p4 }
  0xda   : > { %v502_v26 = vpop.permute.xlu0 %501 }
  0xdb   : > { %v658_v39 = vsel %vm656_vm7, %v641_v35, %v502_v26  ;;  %v493_v57 = vpop.permute.xlu2 %492  ;;  %p1129_p2 = pneg %p1128_p1 }
  0xdc   : > { %v675_v44 = vsel %vm673_vm8, %v658_v39, %v523_v21 }
  0xdd   : > { %p1134_p7 = pnand %p1133_p6, %p1129_p2 }
  0xe0   : > { %v554_v31 = vpop.permute.xlu1 %553 }
  0xe1   : > { %v692_v46 = vsel %vm690_vm10, %v675_v44, %v554_v31 }
  0xe2   : > { %v527_v48 = vpop.permute.xlu0 %526 }
  0xe3   : > { %v679_v36 = vsel %vm673_vm8, %v662_v54, %v527_v48  ;;  %v516_v8 = vpop.permute.xlu2 %515 }
  0xe4   : > { %v696_v41 = vsel %vm690_vm10, %v679_v36, %v558_v18 }
  0xe8   : > { %v577_v40 = vpop.permute.xlu1 %576 }
  0xe9   : > { %v713_v45 = vsel %vm707_vm9, %v696_v41, %v577_v40 }
  0xea   : > { %994 = vmatmul.msk.bf16.vlgmr.msra.gmra.mxu1 %vm748_vm11, %v713_v45  ;;  %v573_v53 = vpop.permute.xlu0 %572 }
  0xeb   : > { %v709_v47 = vsel %vm707_vm9, %v692_v46, %v573_v53  ;;  %v392_v55 = vpop.permute.xlu2 %391  ;;  %v1109_v46 = vld [vmem:[%s1726_s2] ss:$0 sm:$0xff] }
  0xec   : > { %992 = vmatmul.msk.bf16.vlgmr.msra.gmra.mxu0 %vm748_vm11, %v709_v47  ;;  %v592_v42 = vsel %vm588_vm3, %v1432_v43, %v392_v55 }
  0xf0   : > { %v441_v49 = vpop.permute.xlu1 %440 }
  0xf1   : > { %v617_v1 = vsel %vm605_vm4, %v600_v61, %v441_v49 }
  0xf2   : > { %v404_v50 = vpop.permute.xlu0 %403 }
  0xf3   : > { %v568_v60 = vpop.permute.xlu2 %567  ;;  %v604_v9 = vsel %vm588_vm3, %v1332_v15, %v404_v50 }
  0xf4   : > { %v621_v22 = vsel %vm605_vm4, %v604_v9, %v445_v27 }
  0xf8   : > { %v466_v51 = vpop.permute.xlu1 %465 }
  0xf9   : > { %v638_v12 = vsel %vm622_vm5, %v621_v22, %v466_v51 }
  0xfa   : > { %v462_v52 = vpop.permute.xlu0 %461 }
  0xfb   : > { %v634_v28 = vsel %vm622_vm5, %v617_v1, %v462_v52  ;;  %v583_v4 = vpop.permute.xlu2 %582 }
  0xfc   : > { %v651_v3 = vsel %vm639_vm6, %v634_v28, %v493_v57 }
 0x100   : > { %v512_v58 = vpop.permute.xlu1 %511 }
 0x101   : > { %v668_v21 = vsel %vm656_vm7, %v651_v3, %v512_v58 }
 0x102   : > { %v497_v59 = vpop.permute.xlu0 %496 }
 0x103   : > { %v655_v14 = vsel %vm639_vm6, %v638_v12, %v497_v59  ;;  %v458_v16 = vpop.permute.xlu2 %457 }
 0x104   : > { %v672_v17 = vsel %vm656_vm7, %v655_v14, %v516_v8 }
 0x108   : > { %v537_v62 = vpop.permute.xlu1 %536 }
 0x109   : > { %v689_v18 = vsel %vm673_vm8, %v672_v17, %v537_v62 }
 0x10a   : > { %v533_v34 = vpop.permute.xlu0 %532  ;;  %v706_v19 = vsel %vm690_vm10, %v689_v18, %v568_v60 }
 0x10b   : > { %v685_v0 = vsel %vm673_vm8, %v668_v21, %v533_v34  ;;  %v504_v15 = vpop.permute.xlu2 %503 }
 0x110   : > { %v564_v2 = vpop.permute.xlu1 %563 }
 0x111   : > { %v702_v5 = vsel %vm690_vm10, %v685_v0, %v564_v2 }
 0x112   : > { %v396_v7 = vpop.permute.xlu0 %395  ;;  %v719_v10 = vsel %vm707_vm9, %v702_v5, %v583_v4 }
 0x113   : > { %997 = vmatmul.msk.bf16.gmra.mxu2 %vm748_vm11, %v719_v10  ;;  %v529_v6 = vpop.permute.xlu2 %528  ;;  %v596_v31 = vsel %vm588_vm3, %v1426_v37, %v396_v7 }
 0x118   : > { %v437_v11 = vpop.permute.xlu1 %436 }
 0x119   : > { %v613_v32 = vsel %vm605_vm4, %v596_v31, %v437_v11 }
 0x11a   : > { %v433_v13 = vpop.permute.xlu0 %432  ;;  %v630_v35 = vsel %vm622_vm5, %v613_v32, %v458_v16 }
 0x11b   : > { %v609_v27 = vsel %vm605_vm4, %v592_v42, %v433_v13  ;;  %v575_v33 = vpop.permute.xlu2 %574 }
 0x120   : > { %v454_v56 = vpop.permute.xlu1 %453 }
 0x121   : > { %v626_v29 = vsel %vm622_vm5, %v609_v27, %v454_v56 }
 0x122   : > { %v587_v20 = vpop.permute.xlu0 %586 }
 0x123   : > { %v723_v23 = vsel %vm707_vm9, %v706_v19, %v587_v20 }
 0x124   : > { %999 = vmatmul.msk.bf16.gmra.mxu3 %vm748_vm11, %v723_v23 }
 0x128   : > { %v489_v25 = vpop.permute.xlu1 %488 }
 0x129   : > { %v647_v39 = vsel %vm639_vm6, %v630_v35, %v489_v25 }
 0x12a   : > { %v485_v24 = vpop.permute.xlu0 %484 }
 0x12b   : > { %v643_v30 = vsel %vm639_vm6, %v626_v29, %v485_v24 }
 0x12c   : > { %v660_v48 = vsel %vm656_vm7, %v643_v30, %v504_v15 }
 0x130   : > { %v525_v63 = vpop.permute.xlu1 %524 }
 0x131   : > { %v677_v38 = vsel %vm673_vm8, %v660_v48, %v525_v63 }
 0x132   : > { %v508_v26 = vpop.permute.xlu0 %507 }
 0x133   : > { %v664_v37 = vsel %vm656_vm7, %v647_v39, %v508_v26 }
 0x134   : > { %v681_v40 = vsel %vm673_vm8, %v664_v37, %v529_v6 }
 0x138   : > { %v560_v57 = vpop.permute.xlu1 %559 }
 0x139   : > { %v698_v41 = vsel %vm690_vm10, %v681_v40, %v560_v57 }
 0x13a   : > { %v556_v43 = vpop.permute.xlu0 %555 }
 0x13b   : > { %v694_v54 = vsel %vm690_vm10, %v677_v38, %v556_v43 }
 0x13c   : > { %v711_v36 = vsel %vm707_vm9, %v694_v54, %v575_v33 }
 0x13d   : > { %993 = vmatmul.msk.bf16.gmra.mxu0 %vm748_vm11, %v711_v36 }
 0x142   : > { %v579_v44 = vpop.permute.xlu0 %578 }
 0x143   : > { %v715_v45 = vsel %vm707_vm9, %v698_v41, %v579_v44 }
 0x144   : > { %995 = vmatmul.msk.bf16.gmra.mxu1 %vm748_vm11, %v715_v45 }
 0x14d   : > { %v808_v53 = vpop.f32.mrf.mxu3 }
 0x14e   : > { %v809_v47 = vadd.f32 %v1109_v46, %v808_v53 }
 0x14f   : > { %v798_v49 = vpop.f32.mrf.mxu2 }
 0x150   : > { %830 = vst [vmem:[%s1659_s4 + $0x60] sm:$0xff] %v809_v47  ;;  %v799_v8 = vadd.f32 %v1109_v46, %v798_v49 }
 0x152   : > { %826 = vst [vmem:[%s1659_s4 + $0x40] sm:$0xff] %v799_v8 }
 0x155   : > { %v810_v50 = vpop.f32.mrf.mxu3 }
 0x156   : > { %v811_v51 = vadd.f32 %v1109_v46, %v810_v50 }
 0x157   : > { %v800_v52 = vpop.f32.mrf.mxu2 }
 0x158   : > { %831 = vst [vmem:[%s1659_s4 + $0x68] sm:$0xff] %v811_v51  ;;  %v801_v55 = vadd.f32 %v1109_v46, %v800_v52 }
 0x15a   : > { %827 = vst [vmem:[%s1659_s4 + $0x48] sm:$0xff] %v801_v55 }
 0x167   : > { %v788_v58 = vpop.f32.mrf.mxu1 }
 0x168   : > { %v789_v59 = vadd.f32 %v1109_v46, %v788_v58 }
 0x169   : > { %v778_v60 = vpop.f32.mrf.mxu0 }
 0x16a   : > { %822 = vst [vmem:[%s1659_s4 + $0x20] sm:$0xff] %v789_v59  ;;  %v779_v61 = vadd.f32 %v1109_v46, %v778_v60 }
 0x16c   : > { %818 = vst [vmem:[%s1659_s4] sm:$0xff] %v779_v61 }
 0x16f   : > { %v790_v62 = vpop.f32.mrf.mxu1 }
 0x170   : > { %v791_v1 = vadd.f32 %v1109_v46, %v790_v62 }
 0x171   : > { %v780_v34 = vpop.f32.mrf.mxu0 }
 0x172   : > { %823 = vst [vmem:[%s1659_s4 + $0x28] sm:$0xff] %v791_v1  ;;  %v781_v28 = vadd.f32 %v1109_v46, %v780_v34 }
 0x174   : > { %819 = vst [vmem:[%s1659_s4 + $0x8] sm:$0xff] %v781_v28 }
 0x196   : > { %v803_v3 = vpop.f32.mrf.mxu2 }
 0x197   : > { %v804_v21 = vadd.f32 %v1109_v46, %v803_v3 }
 0x199   : > { %828 = vst [vmem:[%s1659_s4 + $0x50] sm:$0xff] %v804_v21 }
 0x19e   : > { %v805_v4 = vpop.f32.mrf.mxu2 }
 0x19f   : > { %v806_v0 = vadd.f32 %v1109_v46, %v805_v4 }
 0x1a1   : > { %829 = vst [vmem:[%s1659_s4 + $0x58] sm:$0xff] %v806_v0 }
 0x1a7   : > { %v813_v2 = vpop.f32.mrf.mxu3 }
 0x1a8   : > { %v814_v5 = vadd.f32 %v1109_v46, %v813_v2 }
 0x1aa   : > { %832 = vst [vmem:[%s1659_s4 + $0x70] sm:$0xff] %v814_v5 }
 0x1af   : > { %v815_v7 = vpop.f32.mrf.mxu3 }
 0x1b0   : > { %v816_v10 = vadd.f32 %v1109_v46, %v815_v7 }
 0x1b2   : > { %833 = vst [vmem:[%s1659_s4 + $0x78] sm:$0xff] %v816_v10 }
 0x1ba   : > { %v783_v9 = vpop.f32.mrf.mxu0 }
 0x1bb   : > { %v784_v11 = vadd.f32 %v1109_v46, %v783_v9 }
 0x1bd   : > { %820 = vst [vmem:[%s1659_s4 + $0x10] sm:$0xff] %v784_v11 }
 0x1c1   : > { %v793_v22 = vpop.f32.mrf.mxu1 }
 0x1c2   : > { %v794_v12 = vadd.f32 %v1109_v46, %v793_v22  ;;  %v785_v13 = vpop.f32.mrf.mxu0 }
 0x1c3   : > { %v786_v14 = vadd.f32 %v1109_v46, %v785_v13 }
 0x1c4   : > { %824 = vst [vmem:[%s1659_s4 + $0x30] sm:$0xff] %v794_v12 }
 0x1c5   : > { %821 = vst [vmem:[%s1659_s4 + $0x18] sm:$0xff] %v786_v14 }
 0x1c9   : > { %v795_v16 = vpop.f32.mrf.mxu1 }
 0x1ca   : > { %v796_v17 = vadd.f32 %v1109_v46, %v795_v16 }
 0x1cc   : > { %825 = vst [vmem:[%s1659_s4 + $0x38] sm:$0xff] %v796_v17 }
 0x1cd   : > { %1137 = shalt.err (!%p1134_p7)
}
 0x1ce   : > { %s1214_s21 = smov 128  }
 0x1cf   : > { %1029 = dma.vmem_to_hbm [thread:$0]  (%p1286_p3), %s850_s20, 2048, %s852_s27, %s835_s15, %s1214_s21, %s1214_s21, %s1207_s24  }
 0x1d0 PF: > { %p1035_p9 = scmp.ge.s32.totalorder %s1204_s19, 2  ;;  %s866_s4 = sand.u32 1, %s1176_s12  }
 0x1d1   : > { %s867_s9 = scalar_lea.sflag [#allocation3], %s866_s4 }
 0x1d2   : > { %p1032_p10 = pnand %p1035_p9, %p1295_p8 }
 0x1d4   : > { %p1033_p11 = pneg %p1032_p10 }
 0x1d6   : > { %1171 = dma.done.wait (%p1033_p11), %s867_s9, 2048  }
 0x1d7   : > { %1173 = vsyncadd (%p1033_p11), %s867_s9, 4294965248  ;;  %s16_s19 = sadd.s32 1, %s1204_s19   ;;  %s1730_s12 = smov %s1180_s13 }
 0x1d8   : > { %p13_p12 = scmp.ge.s32.totalorder %s16_s19, 6   ;;  %s1731_s13 = smov %s1184_s14 }
 0x1d9   : > { %s1732_s14 = smov %s1304_s30  ;;  %s1733_s15 = smov %s1196_s17 }
 0x1da   : > { %s1734_s16 = smov %s1200_s18  ;;  %s1735_s17 = smov %s1738_s22 }
 0x1db   : > { %s1736_s18 = smov %s1742_s23  ;;  %15 = sbr.rel (!%p13_p12) target bundleno = 5 (0x5), region = 67 }
 0x1e0   :  { %873 = vsyncpa [#allocation3], 1 }
 0x1e1   :  { %875 = vsyncpa [#allocation3 + $0x1], 1 }

</bundles_post_ra>
